<compile_context>
chip_gen: v7x
topology: tpu7x:2x2x1
jax: 0.10.0
libtpu: 0.0.40
codegen_flags: <defaults>
</compile_context>

<pallas_src>
import functools

import jax
import jax.numpy as jnp
from jax.experimental import pallas as pl

# STSMWrapper hyper-parameters (H shrunk from the default 64 for a small demo).
H_PERT = 4        # number of random perturbations (torch module's self.H)
Q = 0.01          # perturbation magnitude (self.Q)
WEIGHT = 1.0      # self.weight
EPS = 1e-8        # self.eps
K_PAD = 128       # lane-dense padding of the class dimension


# ----------------------------------------------------------------------------
# Fused kernel: linear model forward (original + perturbed inputs) + STSM
# sum-of-squares + mean cross-entropy, all in one single-step pallas_call.
#   x_flat : (B, D)          unperturbed, flattened input
#   dx_flat: (H_PERT*B, D)   perturbations (NOT x+dx; dy = dx @ W by linearity)
#   w_pad  : (D, K_PAD)      classifier weights, zero-padded to 128 lanes
#   b_pad  : (1, K_PAD)      bias, zero-padded
#   onehot : (B, K_PAD)      one-hot targets (padded lanes are always zero)
# Outputs: padded logits (B, K_PAD), sum((dy+eps)^2) (1,1), mean CE (1,1).
# ----------------------------------------------------------------------------
def _stsm_fused_kernel(x_ref, dx_ref, w_ref, b_ref, onehot_ref,
                       y_ref, sumsq_ref, ce_ref, *, k_real):
    w = w_ref[...]

    # Unperturbed logits: y = x @ W + b  (padded lanes stay exactly 0).
    y = jnp.dot(x_ref[...], w, preferred_element_type=jnp.float32) + b_ref[...]
    y_ref[...] = y

    # delta_y = model(x+dx) - model(x) == dx @ W for the linear model
    # (bias cancels) -> no subtraction of large logits, bf16-safe if desired.
    dy = jnp.dot(dx_ref[...], w, preferred_element_type=jnp.float32)

    # Lane mask: only the first k_real of K_PAD lanes are real classes.
    k_pad = w.shape[1]
    lane = jax.lax.broadcasted_iota(jnp.int32, (1, k_pad), 1)
    valid = lane < k_real

    # STSM numerator: sum((dy + eps)^2) over real lanes only.
    sq = jnp.square(dy + EPS)
    sumsq_ref[...] = jnp.sum(jnp.where(valid, sq, 0.0), keepdims=True)

    # Mean cross-entropy over the batch; padded lanes excluded from the lse.
    y_m = jnp.where(valid, y, -1e30)
    m = jnp.max(y_m, axis=-1, keepdims=True)                               # (B,1)
    lse = m + jnp.log(jnp.sum(jnp.exp(y_m - m), axis=-1, keepdims=True))   # (B,1)
    picked = jnp.sum(onehot_ref[...] * y, axis=-1, keepdims=True)          # (B,1)
    nll = lse - picked                                                     # (B,1)
    ce_ref[...] = jnp.sum(nll, keepdims=True) / nll.shape[0]


def stsm_fused_call(x_flat, dx_flat, w_pad, b_pad, onehot_pad, *, k_real):
    b_rows = x_flat.shape[0]
    k_pad = w_pad.shape[1]
    kernel = functools.partial(_stsm_fused_kernel, k_real=k_real)
    # No grid: for these sizes every operand (x, dx, W, b, onehot, outputs)
    # fits in VMEM at once, so a single kernel step avoids all per-step
    # pipeline overhead, the accumulator scratch, and a second launch.
    return pl.pallas_call(
        kernel,
        out_shape=(
            jax.ShapeDtypeStruct((b_rows, k_pad), jnp.float32),  # padded logits
            jax.ShapeDtypeStruct((1, 1), jnp.float32),           # sum((dy+eps)^2)
            jax.ShapeDtypeStruct((1, 1), jnp.float32),           # mean CE
        ),
    )(x_flat, dx_flat, w_pad, b_pad, onehot_pad)


# ----------------------------------------------------------------------------
# STSMWrapper.forward equivalent.
# ----------------------------------------------------------------------------
@jax.jit
def stsm_wrapper_forward(x, target, w, b, noise_key):
    B, C, Hs, Ws = x.shape
    D = C * Hs * Ws
    K = w.shape[1]
    assert K <= K_PAD, "class count must fit in one lane-padded tile"

    # delta_x = torch.rand(H, *input.shape) * 2Q - Q   (glue: input prep)
    delta_x = (
        jax.random.uniform(noise_key, (H_PERT,) + x.shape, dtype=x.dtype) * (2.0 * Q)
        - Q
    )

    x_flat = x.reshape(B, D)
    dx_flat = delta_x.reshape(H_PERT * B, D)

    # Zero-pad the classifier head to K_PAD lanes (lane-dense output tiles).
    w_pad = jnp.zeros((D, K_PAD), dtype=jnp.float32).at[:, :K].set(w)
    b_pad = jnp.zeros((1, K_PAD), dtype=jnp.float32).at[:, :K].set(b)
    # target values are < K, so the padded one-hot lanes are always zero.
    onehot_pad = jax.nn.one_hot(target, K_PAD, dtype=jnp.float32)

    y_pad, sumsq, ce = stsm_fused_call(
        x_flat, dx_flat, w_pad, b_pad, onehot_pad, k_real=K
    )
    y = y_pad[:, :K]                  # model(input)['output']

    # stsm = sqrt(mean((dy + eps)^2)) over H * B * K elements.
    stsm = jnp.sqrt(sumsq[0, 0] / (H_PERT * B * K))
    stsm_loss = WEIGHT * stsm
    total_loss = ce[0, 0] + stsm_loss
    return y, total_loss


if __name__ == "__main__":
    B, C, Hs, Ws = 2, 4, 16, 16
    K = 8
    D = C * Hs * Ws

    key = jax.random.PRNGKey(0)
    kx, kt, kw, kn = jax.random.split(key, 4)

    x = jax.random.normal(kx, (B, C, Hs, Ws), dtype=jnp.float32)
    target = jax.random.randint(kt, (B,), 0, K, dtype=jnp.int32)

    # Deterministic synthetic inner-model parameters.
    w = jax.random.normal(kw, (D, K), dtype=jnp.float32) * 0.02
    b = jnp.zeros((1, K), dtype=jnp.float32)

    y, total_loss = stsm_wrapper_forward(x, target, w, b, kn)
    jax.block_until_ready((y, total_loss))
    print("KERNEL_OK")
</pallas_src>

<mosaic_0001>
module attributes {stable_mosaic.version = 11 : i64} {
  func.func @_stsm_fused_kernel(%arg0: memref<2x1024xf32, #tpu.memory_space<vmem>>, %arg1: memref<8x1024xf32, #tpu.memory_space<vmem>>, %arg2: memref<1024x128xf32, #tpu.memory_space<vmem>>, %arg3: memref<1x128xf32, #tpu.memory_space<vmem>>, %arg4: memref<2x128xf32, #tpu.memory_space<vmem>>, %arg5: memref<2x128xf32, #tpu.memory_space<vmem>>, %arg6: memref<1x1xf32, #tpu.memory_space<vmem>>, %arg7: memref<1x1xf32, #tpu.memory_space<vmem>>) attributes {dimension_semantics = [], scalar_prefetch = 0 : i64, scratch_operands = 0 : i64, tpu.core_type = #tpu.core_type<tc>} {
    %c0 = arith.constant 0 : index
    %c0_0 = arith.constant 0 : index
    %0 = vector.load %arg2[%c0, %c0_0] : memref<1024x128xf32, #tpu.memory_space<vmem>>, vector<1024x128xf32>
    %c0_1 = arith.constant 0 : index
    %c0_2 = arith.constant 0 : index
    %1 = vector.load %arg0[%c0_1, %c0_2] : memref<2x1024xf32, #tpu.memory_space<vmem>>, vector<2x1024xf32>
    %cst = arith.constant dense<0.000000e+00> : vector<2x128xf32>
    %2 = tpu.matmul %1, %0, %cst {dimension_numbers = #tpu.dot_dimension_numbers<[1], [0], [0], [1], [0, 0, 1, 1], [], []>} : vector<2x1024xf32>, vector<1024x128xf32>, vector<2x128xf32> -> vector<2x128xf32>
    %c0_3 = arith.constant 0 : index
    %c0_4 = arith.constant 0 : index
    %3 = vector.load %arg3[%c0_3, %c0_4] : memref<1x128xf32, #tpu.memory_space<vmem>>, vector<1x128xf32>
    %4 = vector.broadcast %3 : vector<1x128xf32> to vector<2x128xf32>
    %5 = arith.addf %2, %4 : vector<2x128xf32>
    %c0_5 = arith.constant 0 : index
    %c0_6 = arith.constant 0 : index
    %6 = vector.load %arg5[%c0_5, %c0_6] : memref<2x128xf32, #tpu.memory_space<vmem>>, vector<2x128xf32>
    tpu.vector_store %arg5[%c0_5, %c0_6], %5 {strides = array<i32>} : memref<2x128xf32, #tpu.memory_space<vmem>>, vector<2x128xf32>,
    %c0_7 = arith.constant 0 : index
    %c0_8 = arith.constant 0 : index
    %7 = vector.load %arg1[%c0_7, %c0_8] : memref<8x1024xf32, #tpu.memory_space<vmem>>, vector<8x1024xf32>
    %cst_9 = arith.constant dense<0.000000e+00> : vector<8x128xf32>
    %8 = tpu.matmul %7, %0, %cst_9 {dimension_numbers = #tpu.dot_dimension_numbers<[1], [0], [0], [1], [0, 0, 1, 1], [], []>} : vector<8x1024xf32>, vector<1024x128xf32>, vector<8x128xf32> -> vector<8x128xf32>
    %9 = tpu.iota {dimensions = array<i32: 1>} : vector<1x128xi32>
    %c8_i32 = arith.constant 8 : i32
    %10 = vector.broadcast %c8_i32 : i32 to vector<1x128xi32>
    %11 = arith.cmpi slt, %9, %10 : vector<1x128xi32>
    %cst_10 = arith.constant 9.99999993E-9 : f32
    %12 = vector.broadcast %cst_10 : f32 to vector<8x128xf32>
    %13 = arith.addf %8, %12 : vector<8x128xf32>
    %14 = arith.mulf %13, %13 : vector<8x128xf32>
    %cst_11 = arith.constant 0.000000e+00 : f32
    %15 = vector.shape_cast %11 : vector<1x128xi1> to vector<1x128xi1>
    %16 = vector.broadcast %15 : vector<1x128xi1> to vector<8x128xi1>
    %17 = vector.broadcast %cst_11 : f32 to vector<8x128xf32>
    %18 = arith.select %16, %14, %17 : vector<8x128xi1>, vector<8x128xf32>
    %19 = vector.shape_cast %18 : vector<8x128xf32> to vector<1x8x128xf32>
    %cst_12 = arith.constant dense<0.000000e+00> : vector<1xf32>
    %20 = vector.multi_reduction <add>, %19, %cst_12 [1, 2] : vector<1x8x128xf32> to vector<1xf32>
    %21 = vector.shape_cast %20 : vector<1xf32> to vector<1x1x1xf32>
    %22 = vector.extract %21[0, 0, 0] : f32 from vector<1x1x1xf32>
    %23 = vector.broadcast %22 : f32 to vector<1x1xf32>
    %c0_13 = arith.constant 0 : index
    %c0_14 = arith.constant 0 : index
    %24 = vector.load %arg6[%c0_13, %c0_14] : memref<1x1xf32, #tpu.memory_space<vmem>>, vector<1x1xf32>
    tpu.vector_store %arg6[%c0_13, %c0_14], %23 {strides = array<i32>} : memref<1x1xf32, #tpu.memory_space<vmem>>, vector<1x1xf32>,
    %cst_15 = arith.constant -1.000000e+30 : f32
    %25 = vector.shape_cast %11 : vector<1x128xi1> to vector<1x128xi1>
    %26 = vector.broadcast %25 : vector<1x128xi1> to vector<2x128xi1>
    %27 = vector.broadcast %cst_15 : f32 to vector<2x128xf32>
    %28 = arith.select %26, %5, %27 : vector<2x128xi1>, vector<2x128xf32>
    %cst_16 = arith.constant dense<0xFF800000> : vector<2xf32>
    %29 = vector.multi_reduction <maximumf>, %28, %cst_16 [1] : vector<2x128xf32> to vector<2xf32>
    %30 = vector.shape_cast %29 : vector<2xf32> to vector<2x1xf32>
    %31 = vector.broadcast %30 : vector<2x1xf32> to vector<2x128xf32>
    %32 = arith.subf %28, %31 : vector<2x128xf32>
    %33 = math.exp %32 : vector<2x128xf32>
    %cst_17 = arith.constant dense<0.000000e+00> : vector<2xf32>
    %34 = vector.multi_reduction <add>, %33, %cst_17 [1] : vector<2x128xf32> to vector<2xf32>
    %35 = vector.shape_cast %34 : vector<2xf32> to vector<2x1xf32>
    %36 = math.log %35 : vector<2x1xf32>
    %37 = arith.addf %30, %36 : vector<2x1xf32>
    %c0_18 = arith.constant 0 : index
    %c0_19 = arith.constant 0 : index
    %38 = vector.load %arg4[%c0_18, %c0_19] : memref<2x128xf32, #tpu.memory_space<vmem>>, vector<2x128xf32>
    %39 = arith.mulf %38, %5 : vector<2x128xf32>
    %cst_20 = arith.constant dense<0.000000e+00> : vector<2xf32>
    %40 = vector.multi_reduction <add>, %39, %cst_20 [1] : vector<2x128xf32> to vector<2xf32>
    %41 = vector.shape_cast %40 : vector<2xf32> to vector<2x1xf32>
    %42 = arith.subf %37, %41 : vector<2x1xf32>
    %43 = vector.shape_cast %42 : vector<2x1xf32> to vector<1x2x1xf32>
    %cst_21 = arith.constant dense<0.000000e+00> : vector<1xf32>
    %44 = vector.multi_reduction <add>, %43, %cst_21 [1, 2] : vector<1x2x1xf32> to vector<1xf32>
    %45 = vector.shape_cast %44 : vector<1xf32> to vector<1x1x1xf32>
    %46 = vector.extract %45[0, 0, 0] : f32 from vector<1x1x1xf32>
    %47 = vector.broadcast %46 : f32 to vector<1x1xf32>
    %cst_22 = arith.constant 2.000000e+00 : f32
    %48 = vector.broadcast %cst_22 : f32 to vector<1x1xf32>
    %49 = arith.divf %47, %48 : vector<1x1xf32>
    %c0_23 = arith.constant 0 : index
    %c0_24 = arith.constant 0 : index
    %50 = vector.load %arg7[%c0_23, %c0_24] : memref<1x1xf32, #tpu.memory_space<vmem>>, vector<1x1xf32>
    tpu.vector_store %arg7[%c0_23, %c0_24], %49 {strides = array<i32>} : memref<1x1xf32, #tpu.memory_space<vmem>>, vector<1x1xf32>,
    return
  }
}

</mosaic_0001>

<bundles_post_ra>
// kernel: stsm_wrapper_forward.1
= control target key start
LH: loop header
LB: loop body
LE: loop exit
PB: predicated region body
PF: predicated region fallthrough
CT: control target
= control target key end

     0   :  { %13 = vsyncpa [#allocation3], 0  ;;  %v1491_v47 = vmov 1983009808   ;;  %v2275_v49 = vlaneseq  ;;  %s2267_s0 = inlined_call_operand.vmem [shape: f32[2,1024], index: 0, kind: input, shape index: {}]   ;;  %s2268_s1 = inlined_call_operand.vmem [shape: f32[8,1024], index: 1, kind: input, shape index: {}]   ;;  %s2269_s2 = inlined_call_operand.vmem [shape: f32[1024,128], index: 2, kind: input, shape index: {}]   ;;  %s2270_s3 = inlined_call_operand.vmem [shape: f32[1,128], index: 3, kind: input, shape index: {}]   ;;  %s2271_s4 = inlined_call_operand.vmem [shape: f32[2,128], index: 4, kind: input, shape index: {}]   ;;  %s2272_s5 = inlined_call_operand.hbm [shape: f32[2,128], index: 5, kind: output, shape index: {0}]   ;;  %s2273_s6 = inlined_call_operand.hbm [shape: f32[1,1], index: 6, kind: output, shape index: {1}]   ;;  %s2274_s7 = inlined_call_operand.hbm [shape: f32[1,1], index: 7, kind: output, shape index: {2}]  }
   0x1   :  { %v41_v0 = vld [vmem:[%s2269_s2 + $0x80] sm:$0xff]  ;;  %v42_v1 = vld [vmem:[%s2269_s2 + $0x88] sm:$0xff]  ;;  %v43_v11 = vld [vmem:[%s2269_s2 + $0x90] sm:$0xff]  ;;  %v166_v48 = vunpack.c.l.s4 %v1491_v47 }
   0x2   :  { %v25_v2 = vld [vmem:[%s2269_s2] sm:$0xff]  ;;  %v1544_v3 = vpack.c.bf16 %v42_v1, %v41_v0  ;;  %v26_v4 = vld [vmem:[%s2269_s2 + $0x8] sm:$0xff]  ;;  %v44_v13 = vld [vmem:[%s2269_s2 + $0x98] sm:$0xff]  ;;  %v169_v0 = vshrl.u32 %v2275_v49, 7 }
   0x3   :  { %v73_v5 = vld [vmem:[%s2269_s2 + $0x180] sm:$0xff]  ;;  %v74_v6 = vld [vmem:[%s2269_s2 + $0x188] sm:$0xff]  ;;  %v1555_v7 = vpack.c.bf16 %v26_v4, %v25_v2  ;;  %v27_v14 = vld [vmem:[%s2269_s2 + $0x10] sm:$0xff]  ;;  %v1582_v16 = vpack.c.bf16 %v44_v13, %v43_v11  ;;  %v167_v63 = vunpack.c.0.s8 %v166_v48 }
   0x4   :  { %v1557_v8 = vpack.c.bf16 %v74_v6, %v73_v5  ;;  %v57_v9 = vld [vmem:[%s2269_s2 + $0x100] sm:$0xff]  ;;  %v58_v10 = vld [vmem:[%s2269_s2 + $0x108] sm:$0xff]  ;;  %1152 = vmatprep.subr.bf16.mxu0 %v1544_v3  ;;  %v28_v15 = vld [vmem:[%s2269_s2 + $0x18] sm:$0xff] }
   0x5   :  { %v1569_v12 = vpack.c.bf16 %v58_v10, %v57_v9  ;;  %1154 = vmatpush3.bf16.msra.mxu0 %v1555_v7  ;;  %v1584_v17 = vpack.c.bf16 %v28_v15, %v27_v14  ;;  %v75_v18 = vld [vmem:[%s2269_s2 + $0x190] sm:$0xff]  ;;  %v76_v19 = vld [vmem:[%s2269_s2 + $0x198] sm:$0xff]  ;;  %v45_v23 = vld [vmem:[%s2269_s2 + $0xa0] sm:$0xff] }
   0x6   :  { %1184 = vmatprep.subr.bf16.mxu1 %v1557_v8  ;;  %v59_v20 = vld [vmem:[%s2269_s2 + $0x110] sm:$0xff]  ;;  %v1596_v21 = vpack.c.bf16 %v76_v19, %v75_v18  ;;  %v60_v22 = vld [vmem:[%s2269_s2 + $0x118] sm:$0xff]  ;;  %v46_v24 = vld [vmem:[%s2269_s2 + $0xa8] sm:$0xff]  ;;  %1156 = vmatprep.subr.bf16.mxu0 %v1582_v16  ;;  %v1748_v19 = vsub.s32 %v167_v63, %v169_v0 }
   0x7   :  { %1186 = vmatpush3.bf16.msra.mxu1 %v1569_v12  ;;  %v1608_v25 = vpack.c.bf16 %v60_v22, %v59_v20  ;;  %v1610_v26 = vpack.c.bf16 %v46_v24, %v45_v23  ;;  %v29_v27 = vld [vmem:[%s2269_s2 + $0x20] sm:$0xff]  ;;  %v30_v28 = vld [vmem:[%s2269_s2 + $0x28] sm:$0xff]  ;;  %v47_v35 = vld [vmem:[%s2269_s2 + $0xb0] sm:$0xff] }
   0x8   :  { %v77_v29 = vld [vmem:[%s2269_s2 + $0x1a0] sm:$0xff]  ;;  %1188 = vmatprep.subr.bf16.mxu1 %v1596_v21  ;;  %v78_v30 = vld [vmem:[%s2269_s2 + $0x1a8] sm:$0xff]  ;;  %v1632_v33 = vpack.c.bf16 %v30_v28, %v29_v27  ;;  %v48_v36 = vld [vmem:[%s2269_s2 + $0xb8] sm:$0xff] }
   0x9   :  { %v61_v31 = vld [vmem:[%s2269_s2 + $0x120] sm:$0xff]  ;;  %v62_v32 = vld [vmem:[%s2269_s2 + $0x128] sm:$0xff]  ;;  %1158 = vmatpush3.bf16.msra.mxu0 %v1584_v17  ;;  %v1634_v34 = vpack.c.bf16 %v78_v30, %v77_v29  ;;  %v31_v37 = vld [vmem:[%s2269_s2 + $0x30] sm:$0xff]  ;;  %v1649_v39 = vpack.c.bf16 %v48_v36, %v47_v35 }
   0xa   :  { %1160 = vmatprep.subr.bf16.mxu0 %v1610_v26  ;;  %v1647_v38 = vpack.c.bf16 %v62_v32, %v61_v31  ;;  %v32_v40 = vld [vmem:[%s2269_s2 + $0x38] sm:$0xff]  ;;  %v79_v41 = vld [vmem:[%s2269_s2 + $0x1b0] sm:$0xff]  ;;  %v49_v46 = vld [vmem:[%s2269_s2 + $0xc0] sm:$0xff] }
   0xb   :  { %1190 = vmatpush3.bf16.msra.mxu1 %v1608_v25  ;;  %v80_v42 = vld [vmem:[%s2269_s2 + $0x1b8] sm:$0xff]  ;;  %v63_v44 = vld [vmem:[%s2269_s2 + $0x130] sm:$0xff]  ;;  %v50_v50 = vld [vmem:[%s2269_s2 + $0xc8] sm:$0xff]  ;;  %v1676_v51 = vpack.c.bf16 %v32_v40, %v31_v37 }
   0xc   :  { %1192 = vmatprep.subr.bf16.mxu1 %v1634_v34  ;;  %v1661_v43 = vpack.c.bf16 %v80_v42, %v79_v41  ;;  %v64_v45 = vld [vmem:[%s2269_s2 + $0x138] sm:$0xff]  ;;  %v81_v52 = vld [vmem:[%s2269_s2 + $0x1c0] sm:$0xff]  ;;  %v82_v53 = vld [vmem:[%s2269_s2 + $0x1c8] sm:$0xff]  ;;  %v1688_v55 = vpack.c.bf16 %v50_v50, %v49_v46 }
   0xd   :  { %1162 = vmatpush3.bf16.msra.mxu0 %v1632_v33  ;;  %v1686_v54 = vpack.c.bf16 %v64_v45, %v63_v44  ;;  %v33_v56 = vld [vmem:[%s2269_s2 + $0x40] sm:$0xff]  ;;  %v34_v57 = vld [vmem:[%s2269_s2 + $0x48] sm:$0xff]  ;;  %v1700_v59 = vpack.c.bf16 %v82_v53, %v81_v52  ;;  %v51_v61 = vld [vmem:[%s2269_s2 + $0xd0] sm:$0xff] }
   0xe   :  { %1164 = vmatprep.subr.bf16.mxu0 %v1649_v39  ;;  %v65_v58 = vld [vmem:[%s2269_s2 + $0x140] sm:$0xff]  ;;  %v66_v60 = vld [vmem:[%s2269_s2 + $0x148] sm:$0xff]  ;;  %v52_v62 = vld [vmem:[%s2269_s2 + $0xd8] sm:$0xff]  ;;  %v1719_v4 = vpack.c.bf16 %v34_v57, %v33_v56 }
   0xf   :  { %1194 = vmatpush3.bf16.msra.mxu1 %v1647_v38  ;;  %v83_v1 = vld [vmem:[%s2269_s2 + $0x1d0] sm:$0xff]  ;;  %v84_v2 = vld [vmem:[%s2269_s2 + $0x1d8] sm:$0xff]  ;;  %v1723_v5 = vpack.c.bf16 %v66_v60, %v65_v58  ;;  %v1725_v6 = vpack.c.bf16 %v52_v62, %v51_v61  ;;  %v53_v15 = vld [vmem:[%s2269_s2 + $0xe0] sm:$0xff] }
  0x10   :  { %1196 = vmatprep.subr.bf16.mxu1 %v1661_v43  ;;  %v35_v9 = vld [vmem:[%s2269_s2 + $0x50] sm:$0xff]  ;;  %v36_v10 = vld [vmem:[%s2269_s2 + $0x58] sm:$0xff]  ;;  %v1737_v13 = vpack.c.bf16 %v84_v2, %v83_v1  ;;  %v54_v18 = vld [vmem:[%s2269_s2 + $0xe8] sm:$0xff] }
  0x11   :  { %1166 = vmatpush3.bf16.msra.mxu0 %v1676_v51  ;;  %v67_v11 = vld [vmem:[%s2269_s2 + $0x150] sm:$0xff]  ;;  %v68_v14 = vld [vmem:[%s2269_s2 + $0x158] sm:$0xff]  ;;  %v85_v20 = vld [vmem:[%s2269_s2 + $0x1e0] sm:$0xff]  ;;  %v1757_v23 = vpack.c.bf16 %v36_v10, %v35_v9  ;;  %v1766_v28 = vpack.c.bf16 %v54_v18, %v53_v15 }
  0x12   :  { %1168 = vmatprep.subr.bf16.mxu0 %v1688_v55  ;;  %v86_v22 = vld [vmem:[%s2269_s2 + $0x1e8] sm:$0xff]  ;;  %v37_v24 = vld [vmem:[%s2269_s2 + $0x60] sm:$0xff]  ;;  %v1764_v27 = vpack.c.bf16 %v68_v14, %v67_v11  ;;  %v55_v36 = vld [vmem:[%s2269_s2 + $0xf0] sm:$0xff] }
  0x13   :  { %1198 = vmatpush3.bf16.msra.mxu1 %v1686_v54  ;;  %v38_v29 = vld [vmem:[%s2269_s2 + $0x68] sm:$0xff]  ;;  %v69_v30 = vld [vmem:[%s2269_s2 + $0x160] sm:$0xff]  ;;  %v1778_v32 = vpack.c.bf16 %v86_v22, %v85_v20  ;;  %v56_v37 = vld [vmem:[%s2269_s2 + $0xf8] sm:$0xff] }
  0x14   :  { %1200 = vmatprep.subr.bf16.mxu1 %v1700_v59  ;;  %v153_v31 = vld [vmem:[%s2267_s0] sm:$0xff]  ;;  %v70_v35 = vld [vmem:[%s2269_s2 + $0x168] sm:$0xff]  ;;  %v87_v42 = vld [vmem:[%s2269_s2 + $0x1f0] sm:$0xff]  ;;  %v1797_v45 = vpack.c.bf16 %v38_v29, %v37_v24  ;;  %v1804_v50 = vpack.c.bf16 %v56_v37, %v55_v36 }
  0x15   :  { %1170 = vmatpush3.bf16.msra.mxu0 %v1719_v4  ;;  %v171_v40 = vrot.slane %v153_v31, %v1748_v19  ;;  %v164_v41 = vcombine.high %v153_v31, %v153_v31  ;;  %v88_v44 = vld [vmem:[%s2269_s2 + $0x1f8] sm:$0xff]  ;;  %v1802_v48 = vpack.c.bf16 %v70_v35, %v69_v30  ;;  %v39_v52 = vld [vmem:[%s2269_s2 + $0x70] sm:$0xff]  ;;  %v105_v60 = vld [vmem:[%s2269_s2 + $0x280] sm:$0xff] }
  0x16   :  { %1172 = vmatprep.subr.bf16.mxu0 %v1725_v6  ;;  %v40_v53 = vld [vmem:[%s2269_s2 + $0x78] sm:$0xff]  ;;  %v71_v56 = vld [vmem:[%s2269_s2 + $0x170] sm:$0xff]  ;;  %v1816_v57 = vpack.c.bf16 %v88_v44, %v87_v42  ;;  %v106_v61 = vld [vmem:[%s2269_s2 + $0x288] sm:$0xff] }
  0x17   :  { %1202 = vmatpush3.bf16.msra.mxu1 %v1723_v5  ;;  %v179_v46 = vcombine.high %v171_v40, %v171_v40  ;;  %v178_v47 = vrot.slane %v164_v41, %v1748_v19  ;;  %v72_v58 = vld [vmem:[%s2269_s2 + $0x178] sm:$0xff]  ;;  %v137_v63 = vld [vmem:[%s2269_s2 + $0x380] sm:$0xff]  ;;  %v138_v0 = vld [vmem:[%s2269_s2 + $0x388] sm:$0xff]  ;;  %v1834_v1 = vpack.c.bf16 %v40_v53, %v39_v52  ;;  %v1840_v9 = vpack.c.bf16 %v106_v61, %v105_v60 }
  0x18   :  { %1204 = vmatprep.subr.bf16.mxu1 %v1737_v13  ;;  %v1838_v2 = vpack.c.bf16 %v72_v58, %v71_v56  ;;  %v89_v10 = vld [vmem:[%s2269_s2 + $0x200] sm:$0xff]  ;;  %v90_v11 = vld [vmem:[%s2269_s2 + $0x208] sm:$0xff]  ;;  %v1852_v15 = vpack.c.bf16 %v138_v0, %v137_v63  ;;  %v107_v20 = vld [vmem:[%s2269_s2 + $0x290] sm:$0xff] }
  0x19   :  { %1174 = vmatpush3.bf16.msra.mxu0 %v1757_v23  ;;  %270 = vmatprep.mubr.f32.mxu0 %v179_v46  ;;  %v180_v62 = vcombine.high %v178_v47, %v178_v47  ;;  %v121_v14 = vld [vmem:[%s2269_s2 + $0x300] sm:$0xff]  ;;  %v122_v18 = vld [vmem:[%s2269_s2 + $0x308] sm:$0xff]  ;;  %v108_v22 = vld [vmem:[%s2269_s2 + $0x298] sm:$0xff]  ;;  %v1870_v30 = vpack.c.bf16 %v90_v11, %v89_v10 }
  0x1a   :  { %1176 = vmatprep.subr.bf16.mxu0 %v1766_v28  ;;  %v139_v24 = vld [vmem:[%s2269_s2 + $0x390] sm:$0xff]  ;;  %v140_v29 = vld [vmem:[%s2269_s2 + $0x398] sm:$0xff]  ;;  %v1874_v31 = vpack.c.bf16 %v122_v18, %v121_v14  ;;  %v1876_v35 = vpack.c.bf16 %v108_v22, %v107_v20  ;;  %v109_v46 = vld [vmem:[%s2269_s2 + $0x2a0] sm:$0xff] }
  0x1b   :  { %1206 = vmatpush3.bf16.msra.mxu1 %v1764_v27  ;;  %340 = vmatprep.mubr.f32.mxu1 %v180_v62  ;;  %v91_v36 = vld [vmem:[%s2269_s2 + $0x210] sm:$0xff]  ;;  %v92_v37 = vld [vmem:[%s2269_s2 + $0x218] sm:$0xff]  ;;  %v1888_v42 = vpack.c.bf16 %v140_v29, %v139_v24  ;;  %v110_v52 = vld [vmem:[%s2269_s2 + $0x2a8] sm:$0xff] }
  0x1c   :  { %1208 = vmatprep.subr.bf16.mxu1 %v1778_v32  ;;  %v123_v41 = vld [vmem:[%s2269_s2 + $0x310] sm:$0xff]  ;;  %v124_v44 = vld [vmem:[%s2269_s2 + $0x318] sm:$0xff]  ;;  %v141_v53 = vld [vmem:[%s2269_s2 + $0x3a0] sm:$0xff]  ;;  %v1906_v58 = vpack.c.bf16 %v92_v37, %v91_v36 }
  0x1d   :  { %1178 = vmatpush3.bf16.msra.mxu0 %v1797_v45  ;;  %v142_v56 = vld [vmem:[%s2269_s2 + $0x3a8] sm:$0xff]  ;;  %v1910_v60 = vpack.c.bf16 %v124_v44, %v123_v41  ;;  %v93_v61 = vld [vmem:[%s2269_s2 + $0x220] sm:$0xff]  ;;  %v111_v10 = vld [vmem:[%s2269_s2 + $0x2b0] sm:$0xff] }
  0x1e   :  { %1180 = vmatprep.subr.bf16.mxu0 %v1804_v50  ;;  %v94_v62 = vld [vmem:[%s2269_s2 + $0x228] sm:$0xff]  ;;  %v1924_v63 = vpack.c.bf16 %v142_v56, %v141_v53  ;;  %v112_v11 = vld [vmem:[%s2269_s2 + $0x2b8] sm:$0xff]  ;;  %v143_v14 = vld [vmem:[%s2269_s2 + $0x3b0] sm:$0xff] }
  0x1f   :  { %1210 = vmatpush3.bf16.msra.mxu1 %v1802_v48  ;;  %v126_v0 = vld [vmem:[%s2269_s2 + $0x328] sm:$0xff]  ;;  %v144_v18 = vld [vmem:[%s2269_s2 + $0x3b8] sm:$0xff]  ;;  %v1942_v20 = vpack.c.bf16 %v94_v62, %v93_v61  ;;  %v95_v22 = vld [vmem:[%s2269_s2 + $0x230] sm:$0xff]  ;;  %v1951_v29 = vpack.c.bf16 %v112_v11, %v111_v10 }
  0x20   :  { %1212 = vmatprep.subr.bf16.mxu1 %v1816_v57  ;;  %v96_v36 = vld [vmem:[%s2269_s2 + $0x238] sm:$0xff]  ;;  %v127_v37 = vld [vmem:[%s2269_s2 + $0x330] sm:$0xff]  ;;  %v1963_v44 = vpack.c.bf16 %v144_v18, %v143_v14  ;;  %v145_v53 = vld [vmem:[%s2269_s2 + $0x3c0] sm:$0xff] }
  0x21   :  { %1182 = vmatpush3.bf16.msra.mxu0 %v1834_v1  ;;  %2285 = vst [vmem:[#allocation9_spill] sm:$0xff] %v1951_v29  ;;  %v128_v41 = vld [vmem:[%s2269_s2 + $0x338] sm:$0xff]  ;;  %v146_v56 = vld [vmem:[%s2269_s2 + $0x3c8] sm:$0xff] }
  0x22   :  { %1216 = vmatprep.subr.bf16.mxu0 %v1840_v9  ;;  %2286 = vst [vmem:[#allocation10_spill] sm:$0xff] %v1963_v44  ;;  %v154_v61 = vld [vmem:[%s2267_s0 + $0x8] sm:$0xff] }
  0x23   :  { %1214 = vmatpush3.bf16.msra.mxu1 %v1838_v2 }
  0x24   :  { %1248 = vmatprep.subr.bf16.mxu1 %v1852_v15  ;;  %271 = vmatmul.mubr.f32.vlgmr.msra.gmra.mrb[0].mxu0 %v171_v40  ;;  %v1912_v40 = vpack.c.bf16 %v110_v52, %v109_v46  ;;  %v113_v46 = vld [vmem:[%s2269_s2 + $0x2c0] sm:$0xff]  ;;  %v114_v52 = vld [vmem:[%s2269_s2 + $0x2c8] sm:$0xff] }
  0x25   :  { %1218 = vmatpush3.bf16.msra.mxu0 %v1870_v30 }
  0x26   :  { %341 = vmatmul.mubr.f32.vlgmr.msra.gmra.mrb[0].mxu1 %v178_v47  ;;  %1220 = vmatprep.subr.bf16.mxu0 %v1876_v35  ;;  %v125_v47 = vld [vmem:[%s2269_s2 + $0x320] sm:$0xff] }
  0x27   :  { %1250 = vmatpush3.bf16.msra.mxu1 %v1874_v31  ;;  %v1949_v24 = vpack.c.bf16 %v126_v0, %v125_v47 }
  0x28   :  { %1252 = vmatprep.subr.bf16.mxu1 %v1888_v42 }
  0x29   :  { %1222 = vmatpush3.bf16.msra.mxu0 %v1906_v58 }
  0x2a   :  { %1224 = vmatprep.subr.bf16.mxu0 %v1912_v40 }
  0x2b   :  { %1254 = vmatpush3.bf16.msra.mxu1 %v1910_v60 }
  0x2c   :  { %1256 = vmatprep.subr.bf16.mxu1 %v1924_v63 }
  0x2d   :  { %14 = vsyncpa [#allocation5], 0  ;;  %1226 = vmatpush3.bf16.msra.mxu0 %v1942_v20  ;;  %v1981_v62 = vpack.c.bf16 %v96_v36, %v95_v22  ;;  %v1984_v47 = vrot.slane %v154_v61, %v1748_v19  ;;  %v181_v0 = vcombine.high %v154_v61, %v154_v61  ;;  %v1988_v10 = vpack.c.bf16 %v128_v41, %v127_v37  ;;  %v97_v14 = vld [vmem:[%s2269_s2 + $0x240] sm:$0xff]  ;;  %v98_v18 = vld [vmem:[%s2269_s2 + $0x248] sm:$0xff]  ;;  %s1493_s23 = smov [#allocation2]  }
  0x2e   :  { %1228 = vmatprep.subr.bf16.mxu0 %v1951_v29  ;;  %v1990_v11 = vpack.c.bf16 %v114_v52, %v113_v46  ;;  %v129_v22 = vld [vmem:[%s2269_s2 + $0x340] sm:$0xff]  ;;  %v2002_v36 = vpack.c.bf16 %v146_v56, %v145_v53  ;;  %v130_v37 = vld [vmem:[%s2269_s2 + $0x348] sm:$0xff]  ;;  %v115_v41 = vld [vmem:[%s2269_s2 + $0x2d0] sm:$0xff]  ;;  %v2023_v49 = vpack.c.bf16 %v98_v18, %v97_v14  ;;  %vm795_vm1 = vcmask 1041408   ;;  %s835_s24 = sshll.u32 %s1493_s23, 4  ;;  %s836_s24 = int_to_ptr.vmem [resolvable:$true] %s835_s24 }
  0x2f   :  { %2287 = vst [vmem:[#allocation11_spill] sm:$0xff] %v1981_v62  ;;  %1258 = vmatpush3.bf16.msra.mxu1 %v1949_v24  ;;  %v116_v46 = vld [vmem:[%s2269_s2 + $0x2d8] sm:$0xff]  ;;  %v196_v52 = vcombine.high %v1984_v47, %v1984_v47  ;;  %v195_v61 = vrot.slane %v181_v0, %v1748_v19  ;;  %v147_v53 = vld [vmem:[%s2269_s2 + $0x3d0] sm:$0xff]  ;;  %v2027_v29 = vpack.c.bf16 %v130_v37, %v129_v22  ;;  %v117_v37 = vld [vmem:[%s2269_s2 + $0x2e0] sm:$0xff]  ;;  %vm814_vm2 = vcmask 1024  }
  0x30   :  { %2288 = vst [vmem:[#allocation12_spill] sm:$0xff] %v1990_v11  ;;  %1260 = vmatprep.subr.bf16.mxu1 %v1963_v44  ;;  %2289 = vst [vmem:[#allocation13_spill] sm:$0xff] %v2002_v36  ;;  %v148_v56 = vld [vmem:[%s2269_s2 + $0x3d8] sm:$0xff]  ;;  %v2029_v19 = vpack.c.bf16 %v116_v46, %v115_v41  ;;  %v99_v0 = vld [vmem:[%s2269_s2 + $0x250] sm:$0xff]  ;;  %vm792_vm3 = vcmask 0  }
  0x31   :  { %1230 = vmatpush3.bf16.msra.mxu0 %v1981_v62  ;;  %2290 = vst [vmem:[#allocation14_spill] sm:$0xff] %v2023_v49  ;;  %410 = vmatprep.mubr.f32.mxu0 %v196_v52  ;;  %v197_v44 = vcombine.high %v195_v61, %v195_v61  ;;  %2291 = vst [vmem:[#allocation15_spill] sm:$0xff] %v2027_v29  ;;  %v100_v62 = vld [vmem:[%s2269_s2 + $0x258] sm:$0xff]  ;;  %v131_v14 = vld [vmem:[%s2269_s2 + $0x350] sm:$0xff]  ;;  %v2041_v18 = vpack.c.bf16 %v148_v56, %v147_v53 }
  0x32   :  { %1232 = vmatprep.subr.bf16.mxu0 %v1990_v11  ;;  %2292 = vst [vmem:[#allocation16_spill] sm:$0xff] %v2029_v19  ;;  %v132_v22 = vld [vmem:[%s2269_s2 + $0x358] sm:$0xff]  ;;  %v118_v41 = vld [vmem:[%s2269_s2 + $0x2e8] sm:$0xff]  ;;  %v149_v46 = vld [vmem:[%s2269_s2 + $0x3e0] sm:$0xff]  ;;  %v2059_v53 = vpack.c.bf16 %v100_v62, %v99_v0 }
  0x33   :  { %1262 = vmatpush3.bf16.msra.mxu1 %v1988_v10  ;;  %2293 = vst [vmem:[#allocation17_spill] sm:$0xff] %v2041_v18  ;;  %480 = vmatprep.mubr.f32.mxu1 %v197_v44  ;;  %v150_v52 = vld [vmem:[%s2269_s2 + $0x3e8] sm:$0xff]  ;;  %v2063_v56 = vpack.c.bf16 %v132_v22, %v131_v14  ;;  %v101_v44 = vld [vmem:[%s2269_s2 + $0x260] sm:$0xff]  ;;  %v119_v22 = vld [vmem:[%s2269_s2 + $0x2f0] sm:$0xff] }
  0x34   :  { %1264 = vmatprep.subr.bf16.mxu1 %v2002_v36  ;;  %v2065_v36 = vpack.c.bf16 %v118_v41, %v117_v37  ;;  %v102_v11 = vld [vmem:[%s2269_s2 + $0x268] sm:$0xff]  ;;  %v133_v62 = vld [vmem:[%s2269_s2 + $0x360] sm:$0xff]  ;;  %v2077_v0 = vpack.c.bf16 %v150_v52, %v149_v46  ;;  %v120_v37 = vld [vmem:[%s2269_s2 + $0x2f8] sm:$0xff] }
  0x35   :  { %1234 = vmatpush3.bf16.msra.mxu0 %v2023_v49  ;;  %v134_v14 = vld [vmem:[%s2269_s2 + $0x368] sm:$0xff]  ;;  %v151_v41 = vld [vmem:[%s2269_s2 + $0x3f0] sm:$0xff]  ;;  %v152_v46 = vld [vmem:[%s2269_s2 + $0x3f8] sm:$0xff]  ;;  %v2095_v52 = vpack.c.bf16 %v102_v11, %v101_v44 }
  0x36   :  { %1236 = vmatprep.subr.bf16.mxu0 %v2029_v19  ;;  %v2101_v19 = vpack.c.bf16 %v120_v37, %v119_v22  ;;  %v104_v49 = vld [vmem:[%s2269_s2 + $0x278] sm:$0xff]  ;;  %v2110_v11 = vpack.c.bf16 %v152_v46, %v151_v41  ;;  %v135_v44 = vld [vmem:[%s2269_s2 + $0x370] sm:$0xff] }
  0x37   :  { %1266 = vmatpush3.bf16.msra.mxu1 %v2027_v29  ;;  %v103_v29 = vld [vmem:[%s2269_s2 + $0x270] sm:$0xff] }
  0x38   :  { %1268 = vmatprep.subr.bf16.mxu1 %v2041_v18  ;;  %v2099_v18 = vpack.c.bf16 %v134_v14, %v133_v62  ;;  %v136_v62 = vld [vmem:[%s2269_s2 + $0x378] sm:$0xff]  ;;  %v2119_v14 = vpack.c.bf16 %v104_v49, %v103_v29 }
  0x39   :  { %1238 = vmatpush3.bf16.msra.mxu0 %v2059_v53  ;;  %v2123_v22 = vpack.c.bf16 %v136_v62, %v135_v44 }
  0x3a   :  { %1240 = vmatprep.subr.bf16.mxu0 %v2065_v36  ;;  %v2302_v49 = vld [vmem:[#allocation17_spill] sm:$0xff] }
  0x3b   :  { %1270 = vmatpush3.bf16.msra.mxu1 %v2063_v56 }
  0x3c   :  { %1272 = vmatprep.subr.bf16.mxu1 %v2077_v0 }
  0x3d   :  { %1242 = vmatpush3.bf16.msra.mxu0 %v2095_v52 }
  0x3e   :  { %1244 = vmatprep.subr.bf16.mxu0 %v2101_v19 }
  0x3f   :  { %1274 = vmatpush3.bf16.msra.mxu1 %v2099_v18 }
  0x40   :  { %1276 = vmatprep.subr.bf16.mxu1 %v2110_v11 }
  0x41   :  { %1246 = vmatpush3.bf16.msra.mxu0 %v2119_v14 }
  0x42   :  { %1280 = vmatprep.subr.bf16.mxu0 %v1544_v3  ;;  %v488_v3 = vld [vmem:[%s2268_s1 + $0x8] sm:$0xff] }
  0x43   :  { %1278 = vmatpush3.bf16.msra.mxu1 %v2123_v22 }
  0x44   :  { %1312 = vmatprep.subr.bf16.mxu1 %v1557_v8  ;;  %411 = vmatmul.mubr.f32.vlgmr.msra.gmra.mrb[2].mxu0 %v1984_v47  ;;  %v490_v8 = vld [vmem:[%s2268_s1 + $0x18] sm:$0xff] }
  0x45   :  { %1282 = vmatpush3.bf16.msra.mxu0 %v1555_v7  ;;  %v487_v7 = vld [vmem:[%s2268_s1] sm:$0xff]  ;;  %562 = vmatprep.mubr.f32.mxu0 %v488_v3 }
  0x46   :  { %481 = vmatmul.mubr.f32.vlgmr.msra.gmra.mrb[2].mxu1 %v195_v61  ;;  %1284 = vmatprep.subr.bf16.mxu0 %v1582_v16  ;;  %v492_v16 = vld [vmem:[%s2268_s1 + $0x28] sm:$0xff] }
  0x47   :  { %1314 = vmatpush3.bf16.msra.mxu1 %v1569_v12  ;;  %632 = vmatprep.mubr.f32.mxu1 %v490_v8  ;;  %v489_v12 = vld [vmem:[%s2268_s1 + $0x10] sm:$0xff] }
  0x48   :  { %1316 = vmatprep.subr.bf16.mxu1 %v1596_v21  ;;  %v2294_v21 = vld [vmem:[#allocation9_spill] sm:$0xff] }
  0x49   :  { %1286 = vmatpush3.bf16.msra.mxu0 %v1584_v17  ;;  %v494_v17 = vld [vmem:[%s2268_s1 + $0x38] sm:$0xff] }
  0x4a   :  { %1288 = vmatprep.subr.bf16.mxu0 %v1610_v26  ;;  %v2296_v26 = vld [vmem:[#allocation11_spill] sm:$0xff] }
  0x4b   :  { %1318 = vmatpush3.bf16.msra.mxu1 %v1608_v25  ;;  %v2295_v25 = vld [vmem:[#allocation10_spill] sm:$0xff] }
  0x4c   :  { %1320 = vmatprep.subr.bf16.mxu1 %v1634_v34  ;;  %v2298_v34 = vld [vmem:[#allocation13_spill] sm:$0xff] }
  0x4d   :  { %1290 = vmatpush3.bf16.msra.mxu0 %v1632_v33  ;;  %v2297_v33 = vld [vmem:[#allocation12_spill] sm:$0xff] }
  0x4e   :  { %1292 = vmatprep.subr.bf16.mxu0 %v1649_v39  ;;  %v2300_v39 = vld [vmem:[#allocation15_spill] sm:$0xff] }
  0x4f   :  { %1322 = vmatpush3.bf16.msra.mxu1 %v1647_v38  ;;  %v2299_v38 = vld [vmem:[#allocation14_spill] sm:$0xff] }
  0x50   :  { %1324 = vmatprep.subr.bf16.mxu1 %v1661_v43  ;;  %v2301_v43 = vld [vmem:[#allocation16_spill] sm:$0xff] }
  0x51   :  { %1294 = vmatpush3.bf16.msra.mxu0 %v1676_v51  ;;  %v491_v51 = vld [vmem:[%s2268_s1 + $0x20] sm:$0xff] }
  0x52   :  { %1296 = vmatprep.subr.bf16.mxu0 %v1688_v55 }
  0x53   :  { %1326 = vmatpush3.bf16.msra.mxu1 %v1686_v54  ;;  %v493_v54 = vld [vmem:[%s2268_s1 + $0x30] sm:$0xff] }
  0x54   :  { %1328 = vmatprep.subr.bf16.mxu1 %v1700_v59  ;;  %v870_v59 = vld [vmem:[%s2270_s3] ss:$0 sm:$0xff] }
  0x55   :  { %1298 = vmatpush3.bf16.msra.mxu0 %v1719_v4 }
  0x56   :  { %1300 = vmatprep.subr.bf16.mxu0 %v1725_v6 }
  0x57   :  { %1330 = vmatpush3.bf16.msra.mxu1 %v1723_v5 }
  0x58   :  { %1332 = vmatprep.subr.bf16.mxu1 %v1737_v13 }
  0x59   :  { %1302 = vmatpush3.bf16.msra.mxu0 %v1757_v23 }
  0x5a   :  { %1304 = vmatprep.subr.bf16.mxu0 %v1766_v28 }
  0x5b   :  { %1334 = vmatpush3.bf16.msra.mxu1 %v1764_v27 }
  0x5c   :  { %1336 = vmatprep.subr.bf16.mxu1 %v1778_v32 }
  0x5d   :  { %1306 = vmatpush3.bf16.msra.mxu0 %v1797_v45 }
  0x5e   :  { %1308 = vmatprep.subr.bf16.mxu0 %v1804_v50  ;;  %v2303_v50 = vlaneseq }
  0x5f   :  { %1338 = vmatpush3.bf16.msra.mxu1 %v1802_v48 }
  0x60   :  { %1340 = vmatprep.subr.bf16.mxu1 %v1816_v57  ;;  %v496_v57 = vand.u32 127, %v2303_v50 }
  0x61   :  { %1310 = vmatpush3.bf16.msra.mxu0 %v1834_v1 }
  0x62   :  { %1344 = vmatprep.subr.bf16.mxu0 %v1840_v9  ;;  %vm497_vm0 = vcmp.lt.s32.totalorder %v496_v57, 8 }
  0x63   :  { %1342 = vmatpush3.bf16.msra.mxu1 %v1838_v2 }
  0x64   :  { %1376 = vmatprep.subr.bf16.mxu1 %v1852_v15  ;;  %563 = vmatmul.mubr.f32.vlgmr.msra.gmra.mrb[4].mxu0 %v487_v7 }
  0x65   :  { %1346 = vmatpush3.bf16.msra.mxu0 %v1870_v30  ;;  %702 = vmatprep.mubr.f32.mxu0 %v492_v16  ;;  %v808_v30 = vld [vmem:[%s2271_s4] sm:$0x3]  ;;  %s1492_s4 = smov [#allocation4]  }
  0x66   :  { %633 = vmatmul.mubr.f32.vlgmr.msra.gmra.mrb[4].mxu1 %v489_v12  ;;  %1348 = vmatprep.subr.bf16.mxu0 %v1876_v35  ;;  %s845_s0 = sshll.u32 %s1492_s4, 4  ;;  %s846_s0 = int_to_ptr.vmem [resolvable:$true] %s845_s0 }
  0x67   :  { %1378 = vmatpush3.bf16.msra.mxu1 %v1874_v31  ;;  %772 = vmatprep.mubr.f32.mxu1 %v494_v17  ;;  %s1421_s25 = scalar_lea.vmem %s846_s0, 16  ;;  %s1425_s26 = scalar_lea.vmem %s846_s0, 32 }
  0x68   :  { %1380 = vmatprep.subr.bf16.mxu1 %v1888_v42  ;;  %p1422_p0 = scmp.ne.s32.totalorder %s846_s0, %s1421_s25  ;;  %p1426_p1 = scmp.lt.s32.totalorder %s846_s0, %s846_s0 }
  0x69   :  { %1350 = vmatpush3.bf16.msra.mxu0 %v1906_v58  ;;  %p1427_p2 = scmp.lt.s32.totalorder %s1425_s26, %s1421_s25 }
  0x6a   :  { %1352 = vmatprep.subr.bf16.mxu0 %v1912_v40 }
  0x6b   :  { %1382 = vmatpush3.bf16.msra.mxu1 %v1910_v60  ;;  %p1428_p3 = por %p1427_p2, %p1426_p1 }
  0x6c   :  { %1384 = vmatprep.subr.bf16.mxu1 %v1924_v63 }
  0x6d   :  { %1354 = vmatpush3.bf16.msra.mxu0 %v1942_v20  ;;  %p1429_p4 = pnand %p1428_p3, %p1422_p0 }
  0x6e   :  { %1356 = vmatprep.subr.bf16.mxu0 %v2294_v21 }
  0x6f   :  { %1386 = vmatpush3.bf16.msra.mxu1 %v1949_v24 }
  0x70   :  { %1388 = vmatprep.subr.bf16.mxu1 %v2295_v25 }
  0x71   :  { %1358 = vmatpush3.bf16.msra.mxu0 %v2296_v26 }
  0x72   :  { %1360 = vmatprep.subr.bf16.mxu0 %v2297_v33 }
  0x73   :  { %1390 = vmatpush3.bf16.msra.mxu1 %v1988_v10 }
  0x74   :  { %1392 = vmatprep.subr.bf16.mxu1 %v2298_v34 }
  0x75   :  { %1362 = vmatpush3.bf16.msra.mxu0 %v2299_v38 }
  0x76   :  { %1364 = vmatprep.subr.bf16.mxu0 %v2301_v43 }
  0x77   :  { %1394 = vmatpush3.bf16.msra.mxu1 %v2300_v39 }
  0x78   :  { %1396 = vmatprep.subr.bf16.mxu1 %v2302_v49 }
  0x79   :  { %1366 = vmatpush3.bf16.msra.mxu0 %v2059_v53 }
  0x7a   :  { %1368 = vmatprep.subr.bf16.mxu0 %v2065_v36 }
  0x7b   :  { %1398 = vmatpush3.bf16.msra.mxu1 %v2063_v56 }
  0x7c   :  { %1400 = vmatprep.subr.bf16.mxu1 %v2077_v0 }
  0x7d   :  { %1370 = vmatpush3.bf16.msra.mxu0 %v2095_v52 }
  0x7e   :  { %1372 = vmatprep.subr.bf16.mxu0 %v2101_v19 }
  0x7f   :  { %1402 = vmatpush3.bf16.msra.mxu1 %v2099_v18 }
  0x80   :  { %1404 = vmatprep.subr.bf16.mxu1 %v2110_v11 }
  0x81   :  { %1374 = vmatpush3.bf16.msra.mxu0 %v2119_v14 }
  0x83   :  { %1406 = vmatpush3.bf16.msra.mxu1 %v2123_v22 }
  0x84   :  { %703 = vmatmul.mubr.f32.vlgmr.msra.gmra.mrb[6].mxu0 %v491_v51 }
  0x86   :  { %773 = vmatmul.mubr.f32.vlgmr.msra.gmra.mrb[6].mxu1 %v493_v54 }
  0xf7   :  { %v903_v55 = vpop.f32.mrb[0].mxu0 }
  0xf8   :  { %v904_v4 = vpop.f32.mrb[1].mxu0 }
  0xf9   :  { %v938_v5 = vpop.f32.mrb[0].mxu1  ;;  %v905_v6 = vadd.f32 %v904_v4, %v903_v55 }
  0xfa   :  { %v939_v13 = vpop.f32.mrb[1].mxu1 }
  0xfb   :  { %v940_v23 = vadd.f32 %v939_v13, %v938_v5  ;;  %v273_v27 = vadd.f32 %v905_v6, %v870_v59 }
  0xfd   :  { %v343_v28 = vadd.f32 %v940_v23, %v273_v27 }
 0x117   :  { %v973_v32 = vpop.f32.mrb[2].mxu0 }
 0x118   :  { %v974_v45 = vpop.f32.mrb[3].mxu0 }
 0x119   :  { %v1008_v48 = vpop.f32.mrb[2].mxu1  ;;  %v975_v1 = vadd.f32 %v974_v45, %v973_v32 }
 0x11a   :  { %v1009_v2 = vpop.f32.mrb[3].mxu1 }
 0x11b   :  { %v1010_v9 = vadd.f32 %v1009_v2, %v1008_v48  ;;  %v413_v15 = vadd.f32 %v975_v1, %v343_v28 }
 0x11d   :  { %v483_v31 = vadd.f32 %v1010_v9, %v413_v15 }
 0x11f   :  { %486 = vst [vmem:[#allocation2] sm:$0x3] %v483_v31  ;;  %v794_v35 = vsel %vm497_vm0, %v483_v31, -1e+30  ;;  %v809_v42 = vmul.f32 %v808_v30, %v483_v31 }
 0x120   :  { %v796_v58 = vsel %vm795_vm1, %v794_v35, -inf }
 0x121   :  { %797 = vmax.xlane.f32.xlu0 %v796_v58  ;;  %v810_v60 = vsel %vm795_vm1, %v809_v42, 0.0 }
 0x122   :  { %811 = vadd.xlane.f32.xlu1 %v810_v60 }
 0x137   :  { %v1043_v40 = vpop.f32.mrb[4].mxu0 }
 0x138   :  { %v1044_v20 = vpop.f32.mrb[5].mxu0 }
 0x139   :  { %v1078_v63 = vpop.f32.mrb[4].mxu1  ;;  %v1045_v29 = vadd.f32 %v1044_v20, %v1043_v40 }
 0x13a   :  { %v1079_v24 = vpop.f32.mrb[5].mxu1 }
 0x13b   :  { %v1080_v47 = vadd.f32 %v1079_v24, %v1078_v63  ;;  %v565_v10 = vadd.f32 1e-08, %v1045_v29 }
 0x13d   :  { %v635_v36 = vadd.f32 %v1080_v47, %v565_v10 }
 0x157   :  { %v1113_v61 = vpop.f32.mrb[6].mxu0 }
 0x158   :  { %v1114_v18 = vpop.f32.mrb[7].mxu0 }
 0x159   :  { %v1148_v19 = vpop.f32.mrb[6].mxu1  ;;  %v1115_v56 = vadd.f32 %v1114_v18, %v1113_v61 }
 0x15a   :  { %v1149_v53 = vpop.f32.mrb[7].mxu1 }
 0x15b   :  { %v1150_v0 = vadd.f32 %v1149_v53, %v1148_v19  ;;  %v705_v37 = vadd.f32 %v1115_v56, %v635_v36 }
 0x15d   :  { %v775_v41 = vadd.f32 %v1150_v0, %v705_v37 }
 0x15f   :  { %v778_v46 = vmul.f32 %v775_v41, %v775_v41 }
 0x161   :  { %v781_v52 = vsel %vm497_vm0, %v778_v46, 0.0 }
 0x162   :  { %782 = vadd.xlane.f32.xlu1 %v781_v52 }
 0x1ae   :  { %v798_v11 = vpop.xlane.xlu0 %797 }
 0x1af   :  { %v799_v44 = vsub.f32 %v794_v35, %v798_v11  ;;  %v812_v3 = vpop.xlane.xlu1 %811 }
 0x1b1   :  { %v800_v62 = vmul.f32 1.442695, %v799_v44 }
 0x1b3   :  { %1417 = vpow2.f32 %v800_v62 }
 0x1bd   :  { %v1418_v14 = vpop.eup %1417 }
 0x1be   :  { %v802_v22 = vsel %vm795_vm1, %v1418_v14, 0.0 }
 0x1bf   :  { %803 = vadd.xlane.f32.xlu0 %v802_v22 }
 0x1ef   :  { %v783_v7 = vpop.xlane.xlu1 %782 }
 0x1f0   :  { %v784_v8 = vrot.slane %v783_v7, 4 }
 0x1f2   :  { %v785_v12 = vadd.f32 %v784_v8, %v783_v7 }
 0x1f4   :  { %v786_v16 = vrot.slane %v785_v12, 2 }
 0x1f6   :  { %v787_v17 = vadd.f32 %v786_v16, %v785_v12 }
 0x1f8   :  { %v788_v21 = vrot.slane %v787_v17, 1 }
 0x1fa   :  { %v789_v25 = vadd.f32 %v788_v21, %v787_v17 }
 0x1fc   :  { %1407 = vpush %v789_v25 }
 0x22d   :  { %s1408_s3 = spop %1407 }
 0x22e   :  { %v791_v49 = vstv %s1408_s3 }
 0x22f   :  { %793 = vst.msk [vmem:[#allocation4] sm:$0x1] %vm792_vm3, %v791_v49 }
 0x24c   :  { %v804_v26 = vpop.xlane.xlu0 %803 }
 0x24d   :  { %1419 = vlog2.f32 %v804_v26 }
 0x257   :  { %v1420_v33 = vpop.eup %1419 }
 0x258   :  { %v806_v34 = vmul.f32 0.6931472, %v1420_v33 }
 0x25a   :  { %v807_v38 = vadd.f32 %v806_v34, %v798_v11 }
 0x25c   :  { %v813_v39 = vsub.f32 %v807_v38, %v812_v3 }
 0x25e   :  { %v815_v43 = vsel %vm814_vm2, %v813_v39, 0.0 }
 0x25f   :  { %816 = vadd.xlane.f32.xlu0 %v815_v43 }
 0x260   :  { %1432 = shalt.err (!%p1429_p4)
}
 0x261   :  { %s1433_s28 = scalar_lea.hbm %s2273_s6, 16 }
 0x262   :  { %p1434_p5 = scmp.ne.s32.totalorder %s2273_s6, %s1433_s28  ;;  %p1437_p6 = scmp.lt.u32.totalorder %s1433_s28, %s2273_s6 }
 0x264   :  { %p1439_p7 = pnand %p1437_p6, %p1434_p5 }
 0x266   :  { %1442 = shalt.err (!%p1439_p7)
}
 0x267   :  { %848 = dma.vmem_to_hbm [thread:$0]  %s846_s0, 16, %s2273_s6, [#allocation5]  }
 0x268   :  { %s1443_s12 = scalar_lea.vmem %s836_s24, 32  ;;  %p1448_p9 = scmp.lt.s32.totalorder %s836_s24, %s836_s24 }
 0x269   :  { %p1444_p8 = scmp.ne.s32.totalorder %s836_s24, %s1443_s12  ;;  %p1449_p10 = scmp.lt.s32.totalorder %s1443_s12, %s1443_s12 }
 0x26b   :  { %p1450_p11 = por %p1449_p10, %p1448_p9 }
 0x26d   :  { %p1451_p12 = pnand %p1450_p11, %p1444_p8 }
 0x26f   :  { %1454 = shalt.err (!%p1451_p12)
}
 0x270   :  { %s1455_s15 = scalar_lea.hbm %s2272_s5, 32 }
 0x271   :  { %p1456_p13 = scmp.ne.s32.totalorder %s2272_s5, %s1455_s15  ;;  %p1459_p0 = scmp.lt.u32.totalorder %s1455_s15, %s2272_s5 }
 0x273   :  { %p1461_p1 = pnand %p1459_p0, %p1456_p13 }
 0x275   :  { %1464 = shalt.err (!%p1461_p1)
}
 0x276   :  { %838 = dma.vmem_to_hbm [thread:$0]  %s836_s24, 32, %s2272_s5, [#allocation3]  }
 0x277   :  { %s1494_s21 = smov [#allocation6]  }
 0x278   :  { %s855_s1 = sshll.u32 %s1494_s21, 4  ;;  %s856_s1 = int_to_ptr.vmem [resolvable:$true] %s855_s1 }
 0x279   :  { %s1465_s3 = scalar_lea.vmem %s856_s1, 16  ;;  %s1469_s4 = scalar_lea.vmem %s856_s1, 32 }
 0x27a   :  { %p1466_p2 = scmp.ne.s32.totalorder %s856_s1, %s1465_s3  ;;  %p1470_p3 = scmp.lt.s32.totalorder %s856_s1, %s856_s1 }
 0x27b   :  { %p1471_p4 = scmp.lt.s32.totalorder %s1469_s4, %s1465_s3 }
 0x27d   :  { %p1472_p5 = por %p1471_p4, %p1470_p3 }
 0x27f   :  { %p1473_p6 = pnand %p1472_p5, %p1466_p2 }
 0x2ec   :  { %v817_v51 = vpop.xlane.xlu0 %816 }
 0x2ed   :  { %v818_v54 = vrot.slane %v817_v51, 4 }
 0x2ef   :  { %v819_v55 = vadd.f32 %v818_v54, %v817_v51 }
 0x2f1   :  { %v820_v59 = vrot.slane %v819_v55, 2 }
 0x2f3   :  { %v821_v4 = vadd.f32 %v820_v59, %v819_v55 }
 0x2f5   :  { %v822_v5 = vrot.slane %v821_v4, 1 }
 0x2f7   :  { %v823_v6 = vadd.f32 %v822_v5, %v821_v4 }
 0x2f9   :  { %1409 = vpush %v823_v6 }
 0x32a   :  { %s1410_s22 = spop %1409 }
 0x32b   :  { %v825_v13 = vstv %s1410_s22 }
 0x32c   :  { %v827_v23 = vmul.f32 0.5, %v825_v13 }
 0x32e   :  { %828 = vst.msk [vmem:[#allocation6] sm:$0x1] %vm792_vm3, %v827_v23 }
 0x32f   :  { %1476 = shalt.err (!%p1473_p6)
}
 0x330   :  { %s1477_s23 = scalar_lea.hbm %s2274_s7, 16 }
 0x331   :  { %p1478_p7 = scmp.ne.s32.totalorder %s2274_s7, %s1477_s23  ;;  %p1481_p8 = scmp.lt.u32.totalorder %s1477_s23, %s2274_s7 }
 0x333   :  { %p1483_p9 = pnand %p1481_p8, %p1478_p7 }
 0x335   :  { %1486 = shalt.err (!%p1483_p9)
}
 0x336   :  { %858 = dma.vmem_to_hbm [thread:$0]  %s856_s1, 16, %s2274_s7, [#allocation5]  }
 0x337   :  { %1487 = dma.done.wait [#allocation3], 32  }
 0x338   :  { %1488 = vsyncadd [#allocation3], 4294967264 }
 0x339   :  { %1489 = dma.done.wait [#allocation5], 32  }
 0x33a   :  { %1490 = vsyncadd [#allocation5], 4294967264 }
 0x33b   :  { %868 = vsyncpa [#allocation3], 1 }
 0x33c   :  { %869 = vsyncpa [#allocation5], 1 }

</bundles_post_ra>
